<compile_context>
chip_gen: v6e
topology: v6e:2x2x1
jax: 0.10.0
libtpu: 0.0.40
codegen_flags: <defaults>
</compile_context>

<pallas_src>
import functools

import jax
import jax.numpy as jnp
from jax.experimental import pallas as pl
from jax.experimental.pallas import tpu as pltpu


_BATCH_GRAN = 512   # batch padding granularity (lane-friendly, bounds padding waste)
_DIN_PAD = 16       # pad tiny d_in (+ ones row) to 16 sublanes for bf16 packing


def _round_up(x, m):
    return ((x + m - 1) // m) * m


def _cdiv(a, b):
    return (a + b - 1) // b


def _device_flags():
    try:
        kind = jax.devices()[0].device_kind.lower()
    except Exception:
        kind = ""
    is_v5e = ("v5e" in kind) or ("v5 lite" in kind) or ("v5litepod" in kind)
    is_v7 = "v7" in kind
    return is_v5e, is_v7


def _tile_plan(batch, tile_cap):
    """Pick (tile, b_pad) with generation-aware caps and bounded padding waste."""
    is_v5e, is_v7 = _device_flags()
    if tile_cap is None:
        # v5e: 16 MiB default scoped VMEM -> 16K tile; v6e/v7x: 32 MiB -> 32K tile.
        tile_cap = 16384 if is_v5e else 32768
    tile_cap = max(_BATCH_GRAN, (tile_cap // _BATCH_GRAN) * _BATCH_GRAN)
    b_pad = _round_up(max(batch, 1), _BATCH_GRAN)
    n_steps = _cdiv(b_pad, tile_cap)
    # v7x has 2 TensorCores: a length-1 grid would idle one core entirely.
    if is_v7 and n_steps == 1 and b_pad >= 2 * _BATCH_GRAN:
        n_steps = 2
    tile = _round_up(_cdiv(b_pad, n_steps), _BATCH_GRAN)
    b_pad = n_steps * tile
    return tile, b_pad


def resnet_kernel(x_ref, w0_ref, w1_ref, b1_ref, w2_ref, b2_ref,
                  w3_ref, b3_ref, o_ref):
    """One batch tile. Activations are feature-major (D, TILE_B); weights (out, in)."""
    bf16 = jnp.bfloat16
    x = x_ref[...]                                   # (16, T) bf16; row d_in = ones

    # Linear 0: bias folded into an extra W0 column (no separate VALU bias pass).
    h = jnp.dot(w0_ref[...], x, preferred_element_type=jnp.float32)   # (32, T) f32

    # ResBlock 1: h = h + relu(W1 @ h + b1)
    t = jnp.dot(w1_ref[...], h.astype(bf16),
                preferred_element_type=jnp.float32) + b1_ref[...]
    h = h + jnp.maximum(t, 0.0)

    # ResBlock 2
    t = jnp.dot(w2_ref[...], h.astype(bf16),
                preferred_element_type=jnp.float32) + b2_ref[...]
    h = h + jnp.maximum(t, 0.0)

    # Final Linear + output ReLU (out_act=True)
    out = jnp.dot(w3_ref[...], h.astype(bf16),
                  preferred_element_type=jnp.float32) + b3_ref[...]
    o_ref[...] = jnp.maximum(out, 0.0).astype(o_ref.dtype)   # lane-dense store


@functools.partial(jax.jit,
                   static_argnames=("tile_cap", "feature_major_out", "out_dtype"))
def resnet_forward(x, params, *, tile_cap=None, feature_major_out=False,
                   out_dtype=jnp.float32):
    """x: (B, d_in) f32.  params = [(W, b)] * 4 with W: (out, in), b: (out, 1).

    feature_major_out=True returns the kernel-native (d_out, B) layout, skipping
    the wrapper-side output transpose pass; out_dtype=bf16 halves store bytes.
    """
    B, d_in = x.shape
    d_out = params[-1][0].shape[0]
    assert d_in + 1 <= _DIN_PAD

    tile, b_pad = _tile_plan(B, tile_cap)

    # Feature-major bf16 input, padded to 16 sublanes with a ones row at index
    # d_in so W0's bias folds into the matmul (K: 8 -> 16 is ~free on the MXU).
    xt = jnp.concatenate(
        [x.T.astype(jnp.bfloat16), jnp.ones((1, B), jnp.bfloat16)], axis=0)
    xt = jnp.pad(xt, ((0, _DIN_PAD - d_in - 1), (0, b_pad - B)))

    w0, b0 = params[0]
    w0a = jnp.concatenate([w0, b0], axis=1)                      # (32, 9)
    w0a = jnp.pad(w0a, ((0, 0), (0, _DIN_PAD - d_in - 1))).astype(jnp.bfloat16)

    flat = [w0a]
    for w, b in params[1:]:
        flat.append(w.astype(jnp.bfloat16))      # bf16 weights -> native MXU path
        flat.append(b.astype(jnp.float32))       # f32 bias, shape (out, 1)

    grid = (b_pad // tile,)

    in_specs = [pl.BlockSpec((_DIN_PAD, tile), lambda i: (0, i))]
    for a in flat:                               # weights/biases: VMEM-resident
        in_specs.append(pl.BlockSpec(a.shape, lambda i: (0, 0)))
    out_specs = pl.BlockSpec((d_out, tile), lambda i: (0, i))

    mm_flops = (int(w0a.shape[0]) * int(w0a.shape[1])
                + sum(int(w.shape[0]) * int(w.shape[1]) for w, _ in params[1:]))
    param_bytes = sum(a.size * a.dtype.itemsize for a in flat)
    out_itemsize = jnp.dtype(out_dtype).itemsize
    cost = pl.CostEstimate(
        flops=2 * b_pad * mm_flops,
        transcendentals=0,
        bytes_accessed=(xt.size * xt.dtype.itemsize
                        + b_pad * d_out * out_itemsize + param_bytes),
    )

    out_t = pl.pallas_call(
        resnet_kernel,
        out_shape=jax.ShapeDtypeStruct((d_out, b_pad), out_dtype),
        grid=grid,
        in_specs=in_specs,
        out_specs=out_specs,
        compiler_params=pltpu.CompilerParams(
            dimension_semantics=("parallel",),   # megacore split on v7x
        ),
        cost_estimate=cost,
    )(xt, *flat)

    out_t = out_t[:, :B]                         # drop batch padding (no-op if none)
    if feature_major_out:
        return out_t                             # (d_out, B), kernel-native layout
    return out_t.T                               # (B, d_out)


def _xavier_uniform(key, fan_in, fan_out, dtype=jnp.float32):
    bound = float(jnp.sqrt(6.0 / (fan_in + fan_out)))
    # PyTorch nn.Linear.weight layout: (out_features, in_features)
    return jax.random.uniform(key, (fan_out, fan_in), dtype,
                              minval=-bound, maxval=bound)


def init_resnet_params(key, units):
    """Mirrors ResNet.__init__ + _init_weights (xavier_uniform weights, zero bias)."""
    dims = [(units[0], units[1])]
    for i in range(1, len(units) - 1, 2):
        assert units[i] == units[i + 1], "ResBlock requires equal in/out units"
        dims.append((units[i], units[i + 1]))
    dims.append((units[-2], units[-1]))

    params = []
    for fi, fo in dims:
        key, sub = jax.random.split(key)
        w = _xavier_uniform(sub, fi, fo)         # (fo, fi)
        b = jnp.zeros((fo, 1), jnp.float32)
        params.append((w, b))
    return params


def resnet_reference(x, params):
    """Pure-f32 JAX reference of the PyTorch forward."""
    (w0, b0), (w1, b1), (w2, b2), (w3, b3) = params
    h = x @ w0.T + b0.T
    h = h + jax.nn.relu(h @ w1.T + b1.T)
    h = h + jax.nn.relu(h @ w2.T + b2.T)
    return jax.nn.relu(h @ w3.T + b3.T)


def resnet_reference_bf16(x, params):
    """Reference mirroring the kernel's bf16-matmul / f32-accumulate numerics
    (including the layer-0 bias folded in as a bf16 column)."""
    bf = jnp.bfloat16
    (w0, b0), (w1, b1), (w2, b2), (w3, b3) = params
    xt = x.T.astype(bf)
    h = (jnp.dot(w0.astype(bf), xt, preferred_element_type=jnp.float32)
         + b0.astype(bf).astype(jnp.float32))
    h = h + jax.nn.relu(jnp.dot(w1.astype(bf), h.astype(bf),
                                preferred_element_type=jnp.float32) + b1)
    h = h + jax.nn.relu(jnp.dot(w2.astype(bf), h.astype(bf),
                                preferred_element_type=jnp.float32) + b2)
    out = jax.nn.relu(jnp.dot(w3.astype(bf), h.astype(bf),
                              preferred_element_type=jnp.float32) + b3)
    return out.T


if __name__ == "__main__":
    units = [8, 32, 32, 32, 32, 16]
    key = jax.random.PRNGKey(0)
    key, xkey = jax.random.split(key)

    x = jax.random.normal(xkey, (2, units[0]), jnp.float32)   # batch=2, d_in=8
    params = init_resnet_params(key, units)

    out = resnet_forward(x, params)
    out = jax.block_until_ready(out)
    assert out.shape == (2, units[-1])

    # Tight check vs a reference with identical bf16-matmul numerics, plus a
    # loose check vs the pure-f32 PyTorch-equivalent math.
    ref_bf16 = resnet_reference_bf16(x, params)
    ref_f32 = resnet_reference(x, params)
    assert jnp.allclose(out, ref_bf16, atol=1e-4, rtol=1e-4), (
        f"max abs err vs bf16 ref: {jnp.max(jnp.abs(out - ref_bf16))}")
    assert jnp.allclose(out, ref_f32, atol=3e-2, rtol=3e-2), (
        f"max abs err vs f32 ref: {jnp.max(jnp.abs(out - ref_f32))}")

    # Fast path: kernel-native feature-major bf16 output (no wrapper transpose,
    # half the output store bytes).
    out_fm = resnet_forward(x, params, feature_major_out=True,
                            out_dtype=jnp.bfloat16)
    out_fm = jax.block_until_ready(out_fm)
    assert out_fm.shape == (units[-1], 2)
    assert jnp.allclose(out_fm.astype(jnp.float32).T, ref_bf16,
                        atol=2e-2, rtol=2e-2), (
        f"max abs err (bf16 out) vs bf16 ref: "
        f"{jnp.max(jnp.abs(out_fm.astype(jnp.float32).T - ref_bf16))}")

    print("KERNEL_OK")
</pallas_src>

<mosaic_0001>
module attributes {stable_mosaic.version = 11 : i64} {
  func.func @resnet_kernel(%arg0: i32, %arg1: memref<16x512xbf16, #tpu.memory_space<vmem>>, %arg2: memref<32x16xbf16, #tpu.memory_space<vmem>>, %arg3: memref<32x32xbf16, #tpu.memory_space<vmem>>, %arg4: memref<32x1xf32, #tpu.memory_space<vmem>>, %arg5: memref<32x32xbf16, #tpu.memory_space<vmem>>, %arg6: memref<32x1xf32, #tpu.memory_space<vmem>>, %arg7: memref<16x32xbf16, #tpu.memory_space<vmem>>, %arg8: memref<16x1xf32, #tpu.memory_space<vmem>>, %arg9: memref<16x512xf32, #tpu.memory_space<vmem>>) attributes {dimension_semantics = [#tpu.dimension_semantics<parallel>], iteration_bounds = array<i64: 1>, scalar_prefetch = 0 : i64, scratch_operands = 0 : i64, tpu.core_type = #tpu.core_type<tc>, window_params = [{transform_indices = @transform_0, window_bounds = array<i64: 16, 512>}, {pipeline_mode = #tpu.pipeline_mode<synchronous>, transform_indices = @transform_1, window_bounds = array<i64: 32, 16>}, {pipeline_mode = #tpu.pipeline_mode<synchronous>, transform_indices = @transform_2, window_bounds = array<i64: 32, 32>}, {pipeline_mode = #tpu.pipeline_mode<synchronous>, transform_indices = @transform_3, window_bounds = array<i64: 32, 1>}, {pipeline_mode = #tpu.pipeline_mode<synchronous>, transform_indices = @transform_4, window_bounds = array<i64: 32, 32>}, {pipeline_mode = #tpu.pipeline_mode<synchronous>, transform_indices = @transform_5, window_bounds = array<i64: 32, 1>}, {pipeline_mode = #tpu.pipeline_mode<synchronous>, transform_indices = @transform_6, window_bounds = array<i64: 16, 32>}, {pipeline_mode = #tpu.pipeline_mode<synchronous>, transform_indices = @transform_7, window_bounds = array<i64: 16, 1>}, {transform_indices = @transform_8, window_bounds = array<i64: 16, 512>}]} {
    %c0 = arith.constant 0 : index
    %c0_0 = arith.constant 0 : index
    %0 = vector.load %arg1[%c0, %c0_0] : memref<16x512xbf16, #tpu.memory_space<vmem>>, vector<16x512xbf16>
    %c0_1 = arith.constant 0 : index
    %c0_2 = arith.constant 0 : index
    %1 = vector.load %arg2[%c0_1, %c0_2] : memref<32x16xbf16, #tpu.memory_space<vmem>>, vector<32x16xbf16>
    %cst = arith.constant dense<0.000000e+00> : vector<32x512xf32>
    %2 = tpu.matmul %1, %0, %cst {dimension_numbers = #tpu.dot_dimension_numbers<[1], [0], [0], [1], [0, 0, 1, 1], [], []>} : vector<32x16xbf16>, vector<16x512xbf16>, vector<32x512xf32> -> vector<32x512xf32>
    %c0_3 = arith.constant 0 : index
    %c0_4 = arith.constant 0 : index
    %3 = vector.load %arg3[%c0_3, %c0_4] : memref<32x32xbf16, #tpu.memory_space<vmem>>, vector<32x32xbf16>
    %4 = arith.truncf %2 : vector<32x512xf32> to vector<32x512xbf16>
    %cst_5 = arith.constant dense<0.000000e+00> : vector<32x512xf32>
    %5 = tpu.matmul %3, %4, %cst_5 {dimension_numbers = #tpu.dot_dimension_numbers<[1], [0], [0], [1], [0, 0, 1, 1], [], []>} : vector<32x32xbf16>, vector<32x512xbf16>, vector<32x512xf32> -> vector<32x512xf32>
    %c0_6 = arith.constant 0 : index
    %c0_7 = arith.constant 0 : index
    %6 = vector.load %arg4[%c0_6, %c0_7] : memref<32x1xf32, #tpu.memory_space<vmem>>, vector<32x1xf32>
    %7 = vector.broadcast %6 : vector<32x1xf32> to vector<32x512xf32>
    %8 = arith.addf %5, %7 : vector<32x512xf32>
    %cst_8 = arith.constant 0.000000e+00 : f32
    %9 = vector.broadcast %cst_8 : f32 to vector<32x512xf32>
    %10 = arith.maximumf %8, %9 : vector<32x512xf32>
    %11 = arith.addf %2, %10 : vector<32x512xf32>
    %c0_9 = arith.constant 0 : index
    %c0_10 = arith.constant 0 : index
    %12 = vector.load %arg5[%c0_9, %c0_10] : memref<32x32xbf16, #tpu.memory_space<vmem>>, vector<32x32xbf16>
    %13 = arith.truncf %11 : vector<32x512xf32> to vector<32x512xbf16>
    %cst_11 = arith.constant dense<0.000000e+00> : vector<32x512xf32>
    %14 = tpu.matmul %12, %13, %cst_11 {dimension_numbers = #tpu.dot_dimension_numbers<[1], [0], [0], [1], [0, 0, 1, 1], [], []>} : vector<32x32xbf16>, vector<32x512xbf16>, vector<32x512xf32> -> vector<32x512xf32>
    %c0_12 = arith.constant 0 : index
    %c0_13 = arith.constant 0 : index
    %15 = vector.load %arg6[%c0_12, %c0_13] : memref<32x1xf32, #tpu.memory_space<vmem>>, vector<32x1xf32>
    %16 = vector.broadcast %15 : vector<32x1xf32> to vector<32x512xf32>
    %17 = arith.addf %14, %16 : vector<32x512xf32>
    %cst_14 = arith.constant 0.000000e+00 : f32
    %18 = vector.broadcast %cst_14 : f32 to vector<32x512xf32>
    %19 = arith.maximumf %17, %18 : vector<32x512xf32>
    %20 = arith.addf %11, %19 : vector<32x512xf32>
    %c0_15 = arith.constant 0 : index
    %c0_16 = arith.constant 0 : index
    %21 = vector.load %arg7[%c0_15, %c0_16] : memref<16x32xbf16, #tpu.memory_space<vmem>>, vector<16x32xbf16>
    %22 = arith.truncf %20 : vector<32x512xf32> to vector<32x512xbf16>
    %cst_17 = arith.constant dense<0.000000e+00> : vector<16x512xf32>
    %23 = tpu.matmul %21, %22, %cst_17 {dimension_numbers = #tpu.dot_dimension_numbers<[1], [0], [0], [1], [0, 0, 1, 1], [], []>} : vector<16x32xbf16>, vector<32x512xbf16>, vector<16x512xf32> -> vector<16x512xf32>
    %c0_18 = arith.constant 0 : index
    %c0_19 = arith.constant 0 : index
    %24 = vector.load %arg8[%c0_18, %c0_19] : memref<16x1xf32, #tpu.memory_space<vmem>>, vector<16x1xf32>
    %25 = vector.broadcast %24 : vector<16x1xf32> to vector<16x512xf32>
    %26 = arith.addf %23, %25 : vector<16x512xf32>
    %cst_20 = arith.constant 0.000000e+00 : f32
    %27 = vector.broadcast %cst_20 : f32 to vector<16x512xf32>
    %28 = arith.maximumf %26, %27 : vector<16x512xf32>
    %c0_21 = arith.constant 0 : index
    %c0_22 = arith.constant 0 : index
    %29 = vector.load %arg9[%c0_21, %c0_22] : memref<16x512xf32, #tpu.memory_space<vmem>>, vector<16x512xf32>
    tpu.vector_store %arg9[%c0_21, %c0_22], %28 {strides = array<i32>} : memref<16x512xf32, #tpu.memory_space<vmem>>, vector<16x512xf32>,
    return
  }
  func.func @transform_0(%arg0: i32) -> (i32, i32) {
    %c0_i32 = arith.constant 0 : i32
    %c0_i32_0 = arith.constant 0 : i32
    return %c0_i32, %arg0 : i32, i32
  }
  func.func @transform_1(%arg0: i32) -> (i32, i32) {
    %c0_i32 = arith.constant 0 : i32
    %c0_i32_0 = arith.constant 0 : i32
    %c0_i32_1 = arith.constant 0 : i32
    return %c0_i32, %c0_i32_0 : i32, i32
  }
  func.func @transform_2(%arg0: i32) -> (i32, i32) {
    %c0_i32 = arith.constant 0 : i32
    %c0_i32_0 = arith.constant 0 : i32
    %c0_i32_1 = arith.constant 0 : i32
    return %c0_i32, %c0_i32_0 : i32, i32
  }
  func.func @transform_3(%arg0: i32) -> (i32, i32) {
    %c0_i32 = arith.constant 0 : i32
    %c0_i32_0 = arith.constant 0 : i32
    %c0_i32_1 = arith.constant 0 : i32
    return %c0_i32, %c0_i32_0 : i32, i32
  }
  func.func @transform_4(%arg0: i32) -> (i32, i32) {
    %c0_i32 = arith.constant 0 : i32
    %c0_i32_0 = arith.constant 0 : i32
    %c0_i32_1 = arith.constant 0 : i32
    return %c0_i32, %c0_i32_0 : i32, i32
  }
  func.func @transform_5(%arg0: i32) -> (i32, i32) {
    %c0_i32 = arith.constant 0 : i32
    %c0_i32_0 = arith.constant 0 : i32
    %c0_i32_1 = arith.constant 0 : i32
    return %c0_i32, %c0_i32_0 : i32, i32
  }
  func.func @transform_6(%arg0: i32) -> (i32, i32) {
    %c0_i32 = arith.constant 0 : i32
    %c0_i32_0 = arith.constant 0 : i32
    %c0_i32_1 = arith.constant 0 : i32
    return %c0_i32, %c0_i32_0 : i32, i32
  }
  func.func @transform_7(%arg0: i32) -> (i32, i32) {
    %c0_i32 = arith.constant 0 : i32
    %c0_i32_0 = arith.constant 0 : i32
    %c0_i32_1 = arith.constant 0 : i32
    return %c0_i32, %c0_i32_0 : i32, i32
  }
  func.func @transform_8(%arg0: i32) -> (i32, i32) {
    %c0_i32 = arith.constant 0 : i32
    %c0_i32_0 = arith.constant 0 : i32
    return %c0_i32, %arg0 : i32, i32
  }
}

</mosaic_0001>

<bundles_post_ra>
// kernel: resnet_forward.1
= control target key start
LH: loop header
LB: loop body
LE: loop exit
PB: predicated region body
PF: predicated region fallthrough
CT: control target
= control target key end

     0   :  { %v739_v1 = vmov 0   ;;  %vm68_vm0 = vcmask 130048   ;;  %vm227_vm1 = vcmask 261120   ;;  %s1026_s0 = inlined_call_operand.vmem [shape: bf16[16,512], index: 0, kind: input, shape index: {}]   ;;  %s1027_s1 = inlined_call_operand.vmem [shape: bf16[32,16], index: 1, kind: input, shape index: {}]   ;;  %s1028_s2 = inlined_call_operand.vmem [shape: bf16[32,32], index: 2, kind: input, shape index: {}]   ;;  %s1029_s3 = inlined_call_operand.vmem [shape: f32[32,1], index: 3, kind: input, shape index: {}]   ;;  %s1030_s5 = inlined_call_operand.vmem [shape: f32[32,1], index: 5, kind: input, shape index: {}]   ;;  %s1031_s7 = inlined_call_operand.vmem [shape: f32[16,1], index: 7, kind: input, shape index: {}]   ;;  %s1032_s4 = inlined_call_operand.vmem [shape: bf16[32,32], index: 4, kind: input, shape index: {}]   ;;  %s1033_s6 = inlined_call_operand.vmem [shape: bf16[16,32], index: 6, kind: input, shape index: {}]   ;;  %s1034_s8 = inlined_call_operand.vmem [shape: f32[16,512], index: 8, kind: output, shape index: {}]  }
   0x1   :  { %v726_v0 = vld [vmem:[%s1026_s0 + $0x4] ss:$16 sps:$4 sm:$0xff]   ;;  %107 = vmatprep.mubr.bf16.mxu0 %v739_v1  ;;  %160 = vmatprep.mubr.bf16.mxu1 %v739_v1  ;;  %v728_v2 = vld [vmem:[%s1026_s0 + $0xc] ss:$16 sps:$4 sm:$0xff]   ;;  %v730_v3 = vld [vmem:[%s1026_s0] ss:$16 sps:$4 sm:$0xff]  }
   0x2   :  { %724 = vset.pattern.permute.xlu0 %v739_v1  ;;  %725 = vset.pattern.permute.xlu1 %v739_v1  ;;  %v731_v4 = vld [vmem:[%s1026_s0 + $0x8] ss:$16 sps:$4 sm:$0xff]   ;;  %v732_v5 = vld [vmem:[%s1027_s1] sm:$0xff]   ;;  %v195_v7 = vld [vmem:[%s1029_s3 + $0x10] sm:$0xff] }
   0x3   :  { %89 = vmatprep.subr.bf16.mxu0 %v726_v0  ;;  %142 = vmatprep.subr.bf16.mxu1 %v728_v2  ;;  %v733_v6 = vld [vmem:[%s1027_s1 + $0x8] sm:$0xff]   ;;  %v193_v8 = vld [vmem:[%s1029_s3] sm:$0xff]  ;;  %v196_v9 = vld [vmem:[%s1029_s3 + $0x18] sm:$0xff] }
   0x4   :  { %90 = vmatpush1.bf16.msra.mxu0 %v730_v3  ;;  %143 = vmatpush1.bf16.msra.mxu1 %v731_v4  ;;  %v194_v10 = vld [vmem:[%s1029_s3 + $0x8] sm:$0xff]  ;;  %v386_v11 = vld [vmem:[%s1030_s5 + $0x10] sm:$0xff]  ;;  %v387_v12 = vld [vmem:[%s1030_s5 + $0x18] sm:$0xff] }
   0x5   :  { %209 = vperm.xlu0 %724, %v195_v7   ;;  %199 = vperm.xlu1 %725, %v193_v8   ;;  %v384_v13 = vld [vmem:[%s1030_s5] sm:$0xff]  ;;  %v385_v14 = vld [vmem:[%s1030_s5 + $0x8] sm:$0xff] }
   0x6   :  { %v572_v15 = vld [vmem:[%s1031_s7] sm:$0xff]  ;;  %v573_v16 = vld [vmem:[%s1031_s7 + $0x8] sm:$0xff] }
   0x7   :  { %704 = vmatmul.mubr.msk.bf16.vlgmr.msra.gmra.mxu0 %vm68_vm0, %v732_v5  ;;  %706 = vmatmul.mubr.msk.bf16.vlgmr.msra.gmra.mxu1 %vm68_vm0, %v732_v5  ;;  %v734_v41 = vld [vmem:[%s1028_s2] sm:$0xff]   ;;  %v735_v42 = vld [vmem:[%s1028_s2 + $0x8] sm:$0xff]  }
   0x8   :  { %117 = vmatprep.mubr.bf16.mxu0 %v739_v1  ;;  %170 = vmatprep.mubr.bf16.mxu1 %v739_v1 }
   0x9   :  { %214 = vperm.xlu0 %724, %v196_v9   ;;  %204 = vperm.xlu1 %725, %v194_v10  }
   0xd   :  { %400 = vperm.xlu0 %724, %v386_v11   ;;  %405 = vperm.xlu1 %725, %v387_v12  }
   0xf   :  { %705 = vmatmul.mubr.msk.bf16.gmra.mxu0 %vm68_vm0, %v733_v6  ;;  %707 = vmatmul.mubr.msk.bf16.gmra.mxu1 %vm68_vm0, %v733_v6 }
  0x10   :  { %266 = vmatprep.mubr.bf16.mxu0 %v739_v1  ;;  %319 = vmatprep.mubr.bf16.mxu1 %v739_v1 }
  0x11   :  { %390 = vperm.xlu0 %724, %v384_v13   ;;  %395 = vperm.xlu1 %725, %v385_v14  }
  0x15   :  { %576 = vperm.xlu0 %724, %v572_v15   ;;  %581 = vperm.xlu1 %725, %v573_v16  }
  0x80   :  { %v200_v47 = vpop.permute.xlu1 %199  ;;  %v210_v50 = vpop.permute.xlu0 %209 }
  0x84   :  { %v205_v55 = vpop.permute.xlu1 %204  ;;  %v215_v60 = vpop.permute.xlu0 %214 }
  0xc7   :  { %v841_v17 = vpop.f32.mrf.mxu0  ;;  %v843_v18 = vpop.f32.mrf.mxu1 }
  0xc9   :  { %v845_v19 = vpop.f32.mrf.mxu0  ;;  %v847_v20 = vpop.f32.mrf.mxu1 }
  0xcb   :  { %v849_v21 = vpop.f32.mrf.mxu0  ;;  %v851_v22 = vpop.f32.mrf.mxu1 }
  0xcc   :  { %v185_v39 = vpack.c.bf16 %v849_v21, %v841_v17  ;;  %v187_v40 = vpack.c.bf16 %v851_v22, %v843_v18 }
  0xcd   :  { %v853_v23 = vpop.f32.mrf.mxu0  ;;  %v855_v24 = vpop.f32.mrf.mxu1 }
  0xce   :  { %v186_v37 = vpack.c.bf16 %v853_v23, %v845_v19  ;;  %v188_v38 = vpack.c.bf16 %v855_v24, %v847_v20 }
  0xcf   :  { %v857_v25 = vpop.f32.mrf.mxu0  ;;  %v859_v26 = vpop.f32.mrf.mxu1 }
  0xd1   :  { %v861_v27 = vpop.f32.mrf.mxu0  ;;  %v863_v28 = vpop.f32.mrf.mxu1 }
  0xd3   :  { %v865_v29 = vpop.f32.mrf.mxu0  ;;  %v867_v30 = vpop.f32.mrf.mxu1 }
  0xd4   :  { %v189_v35 = vpack.c.bf16 %v865_v29, %v857_v25  ;;  %v191_v36 = vpack.c.bf16 %v867_v30, %v859_v26 }
  0xd5   :  { %v869_v31 = vpop.f32.mrf.mxu0  ;;  %v871_v32 = vpop.f32.mrf.mxu1 }
  0xd6   :  { %v190_v33 = vpack.c.bf16 %v869_v31, %v861_v27  ;;  %v192_v34 = vpack.c.bf16 %v871_v32, %v863_v28 }
  0xd8   :  { %246 = vmatprep.subr.bf16.mxu0 %v190_v33  ;;  %299 = vmatprep.subr.bf16.mxu1 %v192_v34 }
  0xd9   :  { %247 = vmatpush1.bf16.msra.mxu0 %v189_v35  ;;  %300 = vmatpush1.bf16.msra.mxu1 %v191_v36 }
  0xda   :  { %248 = vmatprep.subr.bf16.mxu0 %v186_v37  ;;  %301 = vmatprep.subr.bf16.mxu1 %v188_v38 }
  0xdd   :  { %249 = vmatpush1.bf16.msra.mxu0 %v185_v39  ;;  %302 = vmatpush1.bf16.msra.mxu1 %v187_v40 }
  0xe0   :  { %710 = vmatmul.mubr.msk.bf16.vlgmr.msra.gmra.mxu0 %vm227_vm1, %v734_v41  ;;  %712 = vmatmul.mubr.msk.bf16.vlgmr.msra.gmra.mxu1 %vm227_vm1, %v734_v41 }
  0xe1   :  { %276 = vmatprep.mubr.bf16.mxu0 %v739_v1  ;;  %329 = vmatprep.mubr.bf16.mxu1 %v739_v1 }
  0xe8   :  { %711 = vmatmul.mubr.msk.bf16.gmra.mxu0 %vm227_vm1, %v735_v42  ;;  %713 = vmatmul.mubr.msk.bf16.gmra.mxu1 %vm227_vm1, %v735_v42 }
  0xe9   :  { %456 = vmatprep.mubr.bf16.mxu0 %v739_v1  ;;  %509 = vmatprep.mubr.bf16.mxu1 %v739_v1 }
 0x1a0   :  { %v268_v43 = vpop.f32.mrf.mxu0  ;;  %v321_v44 = vpop.f32.mrf.mxu1 }
 0x1a1   :  { %v269_v61 = vadd.f32 %v268_v43, %v200_v47  ;;  %v322_v62 = vadd.f32 %v321_v44, %v200_v47 }
 0x1a2   :  { %v270_v45 = vpop.f32.mrf.mxu0  ;;  %v323_v46 = vpop.f32.mrf.mxu1 }
 0x1a3   :  { %v271_v63 = vadd.f32 %v270_v45, %v200_v47  ;;  %v324_v0 = vadd.f32 %v323_v46, %v200_v47 }
 0x1a4   :  { %v272_v48 = vpop.f32.mrf.mxu0  ;;  %v325_v49 = vpop.f32.mrf.mxu1 }
 0x1a5   :  { %v273_v8 = vadd.f32 %v272_v48, %v205_v55  ;;  %v326_v9 = vadd.f32 %v325_v49, %v205_v55  ;;  %v341_v38 = vmax.f32 %v271_v63, 0.0  ;;  %v343_v39 = vmax.f32 %v324_v0, 0.0  ;;  %v406_v63 = vpop.permute.xlu1 %405 }
 0x1a6   :  { %v274_v51 = vpop.f32.mrf.mxu0  ;;  %v327_v52 = vpop.f32.mrf.mxu1 }
 0x1a7   :  { %v275_v56 = vadd.f32 %v274_v51, %v205_v55  ;;  %v328_v57 = vadd.f32 %v327_v52, %v205_v55  ;;  %v344_v42 = vmax.f32 %v273_v8, 0.0  ;;  %v346_v43 = vmax.f32 %v326_v9, 0.0 }
 0x1a8   :  { %v278_v53 = vpop.f32.mrf.mxu0  ;;  %v331_v54 = vpop.f32.mrf.mxu1 }
 0x1a9   :  { %v279_v2 = vadd.f32 %v278_v53, %v210_v50  ;;  %v332_v3 = vadd.f32 %v331_v54, %v210_v50  ;;  %v345_v12 = vmax.f32 %v275_v56, 0.0  ;;  %v347_v13 = vmax.f32 %v328_v57, 0.0  ;;  %v396_v8 = vpop.permute.xlu1 %395 }
 0x1aa   :  { %v280_v58 = vpop.f32.mrf.mxu0  ;;  %v333_v59 = vpop.f32.mrf.mxu1  ;;  %v342_v53 = vmax.f32 %v322_v62, 0.0  ;;  %v944_v54 = vadd.f32 %v344_v42, %v849_v21 }
 0x1ab   :  { %v281_v4 = vadd.f32 %v280_v58, %v210_v50  ;;  %v334_v5 = vadd.f32 %v333_v59, %v210_v50  ;;  %v348_v40 = vmax.f32 %v279_v2, 0.0  ;;  %v350_v41 = vmax.f32 %v332_v3, 0.0  ;;  %v736_v58 = vld [vmem:[%s1032_s4] sm:$0xff]   ;;  %v401_v62 = vpop.permute.xlu0 %400 }
 0x1ac   :  { %v282_v6 = vpop.f32.mrf.mxu0  ;;  %v335_v7 = vpop.f32.mrf.mxu1  ;;  %v904_v46 = vadd.f32 %v345_v12, %v853_v23  ;;  %v907_v47 = vadd.f32 %v347_v13, %v855_v24  ;;  %v340_v24 = vmax.f32 %v269_v61, 0.0 }
 0x1ad   :  { %v283_v10 = vadd.f32 %v282_v6, %v215_v60  ;;  %v336_v11 = vadd.f32 %v335_v7, %v215_v60  ;;  %v349_v14 = vmax.f32 %v281_v4, 0.0  ;;  %v351_v15 = vmax.f32 %v334_v5, 0.0 }
 0x1ae   :  { %v284_v16 = vpop.f32.mrf.mxu0  ;;  %v337_v33 = vpop.f32.mrf.mxu1  ;;  %v958_v21 = vadd.f32 %v340_v24, %v841_v17  ;;  %v737_v17 = vld [vmem:[%s1032_s4 + $0x8] sm:$0xff]  }
 0x1af   :  { %v352_v34 = vmax.f32 %v283_v10, 0.0  ;;  %v354_v35 = vmax.f32 %v336_v11, 0.0  ;;  %v285_v36 = vadd.f32 %v284_v16, %v215_v60  ;;  %v338_v37 = vadd.f32 %v337_v33, %v215_v60  ;;  %v391_v7 = vpop.permute.xlu0 %390 }
 0x1b0   :  { %v916_v50 = vadd.f32 %v349_v14, %v861_v27  ;;  %v919_v51 = vadd.f32 %v351_v15, %v863_v28  ;;  %v934_v27 = vadd.f32 %v341_v38, %v845_v19  ;;  %v937_v28 = vadd.f32 %v343_v39, %v847_v20 }
 0x1b1   :  { %v353_v44 = vmax.f32 %v285_v36, 0.0  ;;  %v355_v45 = vmax.f32 %v338_v37, 0.0  ;;  %v910_v48 = vadd.f32 %v352_v34, %v865_v29  ;;  %v913_v49 = vadd.f32 %v354_v35, %v867_v30 }
 0x1b2   :  { %v928_v29 = vadd.f32 %v348_v40, %v857_v25  ;;  %v931_v30 = vadd.f32 %v350_v41, %v859_v26  ;;  %v947_v25 = vadd.f32 %v346_v43, %v851_v22  ;;  %v377_v20 = vpack.c.bf16 %v904_v46, %v934_v27 }
 0x1b3   :  { %v922_v52 = vadd.f32 %v353_v44, %v869_v31  ;;  %v925_v23 = vadd.f32 %v355_v45, %v871_v32  ;;  %v379_v55 = vpack.c.bf16 %v907_v47, %v937_v28  ;;  %v961_v22 = vadd.f32 %v342_v53, %v843_v18 }
 0x1b4   :  { %v380_v26 = vpack.c.bf16 %v910_v48, %v928_v29  ;;  %v382_v19 = vpack.c.bf16 %v913_v49, %v931_v30  ;;  %v376_v56 = vpack.c.bf16 %v944_v54, %v958_v21 }
 0x1b5   :  { %v381_v31 = vpack.c.bf16 %v922_v52, %v916_v50  ;;  %v383_v32 = vpack.c.bf16 %v925_v23, %v919_v51  ;;  %v378_v57 = vpack.c.bf16 %v947_v25, %v961_v22 }
 0x1b7   :  { %436 = vmatprep.subr.bf16.mxu0 %v381_v31  ;;  %489 = vmatprep.subr.bf16.mxu1 %v383_v32 }
 0x1b8   :  { %437 = vmatpush1.bf16.msra.mxu0 %v380_v26  ;;  %490 = vmatpush1.bf16.msra.mxu1 %v382_v19 }
 0x1b9   :  { %438 = vmatprep.subr.bf16.mxu0 %v377_v20  ;;  %491 = vmatprep.subr.bf16.mxu1 %v379_v55 }
 0x1bc   :  { %439 = vmatpush1.bf16.msra.mxu0 %v376_v56  ;;  %492 = vmatpush1.bf16.msra.mxu1 %v378_v57 }
 0x1bf   :  { %716 = vmatmul.mubr.msk.bf16.vlgmr.msra.gmra.mxu0 %vm227_vm1, %v736_v58  ;;  %718 = vmatmul.mubr.msk.bf16.vlgmr.msra.gmra.mxu1 %vm227_vm1, %v736_v58 }
 0x1c0   :  { %466 = vmatprep.mubr.bf16.mxu0 %v739_v1  ;;  %519 = vmatprep.mubr.bf16.mxu1 %v739_v1 }
 0x1c7   :  { %717 = vmatmul.mubr.msk.bf16.gmra.mxu0 %vm227_vm1, %v737_v17  ;;  %719 = vmatmul.mubr.msk.bf16.gmra.mxu1 %vm227_vm1, %v737_v17 }
 0x1c8   :  { %624 = vmatprep.mubr.bf16.mxu0 %v739_v1  ;;  %667 = vmatprep.mubr.bf16.mxu1 %v739_v1 }
 0x27f   :  { %v458_v18 = vpop.f32.mrf.mxu0  ;;  %v511_v59 = vpop.f32.mrf.mxu1 }
 0x280   :  { %v459_v13 = vadd.f32 %v458_v18, %v391_v7  ;;  %v512_v1 = vadd.f32 %v511_v59, %v391_v7 }
 0x281   :  { %v460_v60 = vpop.f32.mrf.mxu0  ;;  %v513_v61 = vpop.f32.mrf.mxu1 }
 0x282   :  { %v461_v14 = vadd.f32 %v460_v60, %v391_v7  ;;  %v514_v15 = vadd.f32 %v513_v61, %v391_v7 }
 0x283   :  { %v462_v0 = vpop.f32.mrf.mxu0  ;;  %v515_v2 = vpop.f32.mrf.mxu1 }
 0x284   :  { %v463_v38 = vadd.f32 %v462_v0, %v396_v8  ;;  %v516_v39 = vadd.f32 %v515_v2, %v396_v8  ;;  %v531_v20 = vmax.f32 %v461_v14, 0.0  ;;  %v533_v55 = vmax.f32 %v514_v15, 0.0  ;;  %v582_v14 = vpop.permute.xlu1 %581 }
 0x285   :  { %v464_v3 = vpop.f32.mrf.mxu0  ;;  %v517_v4 = vpop.f32.mrf.mxu1 }
 0x286   :  { %v465_v9 = vadd.f32 %v464_v3, %v396_v8  ;;  %v518_v10 = vadd.f32 %v517_v4, %v396_v8  ;;  %v534_v58 = vmax.f32 %v463_v38, 0.0  ;;  %v536_v17 = vmax.f32 %v516_v39, 0.0 }
 0x287   :  { %v468_v5 = vpop.f32.mrf.mxu0  ;;  %v521_v6 = vpop.f32.mrf.mxu1 }
 0x288   :  { %v469_v16 = vadd.f32 %v468_v5, %v401_v62  ;;  %v522_v33 = vadd.f32 %v521_v6, %v401_v62  ;;  %v535_v42 = vmax.f32 %v465_v9, 0.0  ;;  %v537_v43 = vmax.f32 %v518_v10, 0.0 }
 0x289   :  { %v470_v11 = vpop.f32.mrf.mxu0  ;;  %v523_v12 = vpop.f32.mrf.mxu1  ;;  %v530_v5 = vmax.f32 %v459_v13, 0.0  ;;  %v532_v6 = vmax.f32 %v512_v1, 0.0 }
 0x28a   :  { %v471_v34 = vadd.f32 %v470_v11, %v401_v62  ;;  %v524_v35 = vadd.f32 %v523_v12, %v401_v62  ;;  %v538_v56 = vmax.f32 %v469_v16, 0.0  ;;  %v540_v57 = vmax.f32 %v522_v33, 0.0 }
 0x28b   :  { %v472_v36 = vpop.f32.mrf.mxu0  ;;  %v525_v37 = vpop.f32.mrf.mxu1  ;;  %v551_v60 = vadd.f32 %v535_v42, %v904_v46  ;;  %v553_v61 = vadd.f32 %v537_v43, %v907_v47  ;;  %v547_v47 = vadd.f32 %v531_v20, %v934_v27 }
 0x28c   :  { %v473_v40 = vadd.f32 %v472_v36, %v406_v63  ;;  %v526_v41 = vadd.f32 %v525_v37, %v406_v63  ;;  %v539_v44 = vmax.f32 %v471_v34, 0.0  ;;  %v541_v45 = vmax.f32 %v524_v35, 0.0 }
 0x28d   :  { %v474_v24 = vpop.f32.mrf.mxu0  ;;  %v527_v53 = vpop.f32.mrf.mxu1  ;;  %v554_v7 = vadd.f32 %v538_v56, %v928_v29  ;;  %v556_v46 = vadd.f32 %v540_v57, %v931_v30  ;;  %v546_v29 = vadd.f32 %v530_v5, %v958_v21  ;;  %v548_v30 = vadd.f32 %v532_v6, %v961_v22 }
 0x28e   :  { %v542_v31 = vmax.f32 %v473_v40, 0.0  ;;  %v544_v32 = vmax.f32 %v526_v41, 0.0  ;;  %v475_v26 = vadd.f32 %v474_v24, %v406_v63  ;;  %v528_v19 = vadd.f32 %v527_v53, %v406_v63 }
 0x28f   :  { %v555_v2 = vadd.f32 %v539_v44, %v916_v50  ;;  %v557_v63 = vadd.f32 %v541_v45, %v919_v51  ;;  %v550_v50 = vadd.f32 %v534_v58, %v944_v54  ;;  %v552_v51 = vadd.f32 %v536_v17, %v947_v25  ;;  %v738_v54 = vld [vmem:[%s1033_s6] sm:$0xff]   ;;  %v577_v25 = vpop.permute.xlu0 %576 }
 0x290   :  { %v543_v18 = vmax.f32 %v475_v26, 0.0  ;;  %v545_v59 = vmax.f32 %v528_v19, 0.0  ;;  %v558_v62 = vadd.f32 %v542_v31, %v910_v48  ;;  %v560_v0 = vadd.f32 %v544_v32, %v913_v49 }
 0x291   :  { %v549_v48 = vadd.f32 %v533_v55, %v937_v28  ;;  %v564_v27 = vpack.c.bf16 %v550_v50, %v546_v29  ;;  %v566_v28 = vpack.c.bf16 %v552_v51, %v548_v30 }
 0x292   :  { %v559_v3 = vadd.f32 %v543_v18, %v922_v52  ;;  %v561_v4 = vadd.f32 %v545_v59, %v925_v23  ;;  %v568_v9 = vpack.c.bf16 %v558_v62, %v554_v7  ;;  %v570_v52 = vpack.c.bf16 %v560_v0, %v556_v46 }
 0x293   :  { %v565_v23 = vpack.c.bf16 %v551_v60, %v547_v47  ;;  %v567_v10 = vpack.c.bf16 %v553_v61, %v549_v48 }
 0x294   :  { %v569_v8 = vpack.c.bf16 %v559_v3, %v555_v2  ;;  %v571_v49 = vpack.c.bf16 %v561_v4, %v557_v63 }
 0x296   :  { %604 = vmatprep.subr.bf16.mxu0 %v569_v8  ;;  %647 = vmatprep.subr.bf16.mxu1 %v571_v49 }
 0x297   :  { %605 = vmatpush1.bf16.msra.mxu0 %v568_v9  ;;  %648 = vmatpush1.bf16.msra.mxu1 %v570_v52 }
 0x298   :  { %606 = vmatprep.subr.bf16.mxu0 %v565_v23  ;;  %649 = vmatprep.subr.bf16.mxu1 %v567_v10 }
 0x29b   :  { %607 = vmatpush1.bf16.msra.mxu0 %v564_v27  ;;  %650 = vmatpush1.bf16.msra.mxu1 %v566_v28 }
 0x29e   :  { %721 = vmatmul.mubr.msk.bf16.vlgmr.msra.gmra.mxu0 %vm227_vm1, %v738_v54  ;;  %722 = vmatmul.mubr.msk.bf16.vlgmr.msra.gmra.mxu1 %vm227_vm1, %v738_v54 }
 0x35e   :  { %v626_v21 = vpop.f32.mrf.mxu0  ;;  %v669_v11 = vpop.f32.mrf.mxu1 }
 0x35f   :  { %v627_v22 = vadd.f32 %v626_v21, %v577_v25  ;;  %v670_v12 = vadd.f32 %v669_v11, %v577_v25 }
 0x360   :  { %v628_v13 = vpop.f32.mrf.mxu0  ;;  %v671_v1 = vpop.f32.mrf.mxu1 }
 0x361   :  { %v678_v15 = vmax.f32 %v627_v22, 0.0  ;;  %v680_v16 = vmax.f32 %v670_v12, 0.0  ;;  %v629_v33 = vadd.f32 %v628_v13, %v577_v25  ;;  %v672_v34 = vadd.f32 %v671_v1, %v577_v25 }
 0x362   :  { %v630_v35 = vpop.f32.mrf.mxu0  ;;  %v673_v36 = vpop.f32.mrf.mxu1 }
 0x363   :  { %686 = vst [vmem:[%s1034_s8] sm:$0xff] %v678_v15  ;;  %688 = vst [vmem:[%s1034_s8 + $0x10] sm:$0xff] %v680_v16  ;;  %v679_v37 = vmax.f32 %v629_v33, 0.0  ;;  %v681_v38 = vmax.f32 %v672_v34, 0.0  ;;  %v631_v39 = vadd.f32 %v630_v35, %v582_v14  ;;  %v674_v40 = vadd.f32 %v673_v36, %v582_v14 }
 0x364   :  { %v632_v41 = vpop.f32.mrf.mxu0  ;;  %v675_v42 = vpop.f32.mrf.mxu1 }
 0x365   :  { %687 = vst [vmem:[%s1034_s8 + $0x8] sm:$0xff] %v679_v37  ;;  %689 = vst [vmem:[%s1034_s8 + $0x18] sm:$0xff] %v681_v38  ;;  %v682_v43 = vmax.f32 %v631_v39, 0.0  ;;  %v684_v44 = vmax.f32 %v674_v40, 0.0  ;;  %v633_v45 = vadd.f32 %v632_v41, %v582_v14  ;;  %v676_v24 = vadd.f32 %v675_v42, %v582_v14 }
 0x367   :  { %690 = vst [vmem:[%s1034_s8 + $0x20] sm:$0xff] %v682_v43  ;;  %692 = vst [vmem:[%s1034_s8 + $0x30] sm:$0xff] %v684_v44  ;;  %v683_v53 = vmax.f32 %v633_v45, 0.0  ;;  %v685_v31 = vmax.f32 %v676_v24, 0.0 }
 0x369   :  { %691 = vst [vmem:[%s1034_s8 + $0x28] sm:$0xff] %v683_v53  ;;  %693 = vst [vmem:[%s1034_s8 + $0x38] sm:$0xff] %v685_v31 }

</bundles_post_ra>
